<compile_context>
chip_gen: v7x
topology: tpu7x:2x2x1
jax: 0.10.0
libtpu: 0.0.40
codegen_flags: <defaults>
</compile_context>

<pallas_src>
import functools
import math

import jax
import jax.numpy as jnp
from jax.experimental import pallas as pl
from jax.experimental.pallas import tpu as pltpu

LN_EPS = 1e-12  # BERT LayerNorm eps
_VMEM_LIMIT = 32 * 1024 * 1024  # safe on v5e/v6e (128 MiB phys) and v7x (64 MiB)


# ----------------------------------------------------------------------------
# Helpers
# ----------------------------------------------------------------------------
def _sublane_align(dtype):
    # 8 for f32, 16 for bf16, 32 for int8 (keeps stores unmasked / lane-dense)
    return 8 * (4 // jnp.dtype(dtype).itemsize)


def _pick_tile(dim, target, align):
    """Largest multiple of `align` that divides `dim` and is <= target; else full dim."""
    if dim <= target:
        return dim
    t = (target // align) * align
    while t >= align:
        if dim % t == 0:
            return t
        t -= align
    return dim


def _gelu(y):
    # TODO(synk): BERT reference uses erf-GELU; tanh approximation used here
    # (EUP-friendly, slight numerical difference vs PyTorch reference).
    return 0.5 * y * (1.0 + jnp.tanh(0.7978845608028654 * (y + 0.044715 * y * y * y)))


def _layer_norm_f32(y, g_ref, b_ref):
    """One-pass LN stats over the last axis (sum & sum-of-squares)."""
    n = y.shape[-1]
    s1 = jnp.sum(y, axis=-1, keepdims=True)
    s2 = jnp.sum(y * y, axis=-1, keepdims=True)
    mu = s1 / n
    var = jnp.maximum(s2 / n - mu * mu, 0.0)
    yn = (y - mu) * jax.lax.rsqrt(var + LN_EPS)
    return yn * g_ref[...].astype(jnp.float32) + b_ref[...].astype(jnp.float32)


# ----------------------------------------------------------------------------
# Tiled matmul + bias (+GELU) kernel
# ----------------------------------------------------------------------------
def _linear_kernel(x_ref, w_ref, b_ref, o_ref, acc_ref, *, activation):
    k = pl.program_id(2)

    @pl.when(k == 0)
    def _():
        acc_ref[...] = jnp.zeros_like(acc_ref)

    acc_ref[...] += jnp.dot(x_ref[...], w_ref[...],
                            preferred_element_type=jnp.float32)

    @pl.when(k == pl.num_programs(2) - 1)
    def _():
        y = acc_ref[...] + b_ref[...].astype(jnp.float32)
        if activation == "gelu":
            y = _gelu(y)
        o_ref[...] = y.astype(o_ref.dtype)


def linear(x2d, w, b, activation=None,
           tm_target=512, tn_target=512, tk_target=1024):
    """x2d: [M, K], w: [K, N], b: [N] -> [M, N]. Tiled, pipelined, f32 accum."""
    M, K = x2d.shape
    N = w.shape[1]
    itemsize = jnp.dtype(x2d.dtype).itemsize
    tm = _pick_tile(M, tm_target, _sublane_align(x2d.dtype))
    tn = _pick_tile(N, tn_target, 128)
    tk = _pick_tile(K, tk_target, 128)
    grid = (M // tm, N // tn, K // tk)
    cost = pl.CostEstimate(
        flops=int(2 * M * N * K),
        transcendentals=int(M * N) if activation == "gelu" else 0,
        bytes_accessed=int((M * K + K * N + M * N) * itemsize + 4 * N),
    )
    return pl.pallas_call(
        functools.partial(_linear_kernel, activation=activation),
        out_shape=jax.ShapeDtypeStruct((M, N), x2d.dtype),
        grid=grid,
        in_specs=[
            pl.BlockSpec((tm, tk), lambda i, j, k: (i, k)),
            pl.BlockSpec((tk, tn), lambda i, j, k: (k, j)),
            pl.BlockSpec((1, tn), lambda i, j, k: (0, j)),
        ],
        out_specs=pl.BlockSpec((tm, tn), lambda i, j, k: (i, j)),
        scratch_shapes=[pltpu.VMEM((tm, tn), jnp.float32)],
        compiler_params=pltpu.CompilerParams(
            dimension_semantics=("parallel", "parallel", "arbitrary"),
            vmem_limit_bytes=_VMEM_LIMIT),
        cost_estimate=cost,
    )(x2d, w, b.reshape(1, N))


# ----------------------------------------------------------------------------
# Tiled matmul + bias (+GELU) + optional residual + LayerNorm (fused epilogue)
# Output keeps full N in lanes so LN is computed per row at finalize.
# ----------------------------------------------------------------------------
def _matmul_ln_kernel(*refs, activation, has_residual):
    if has_residual:
        x_ref, w_ref, b_ref, res_ref, g_ref, bt_ref, o_ref, acc_ref = refs
    else:
        x_ref, w_ref, b_ref, g_ref, bt_ref, o_ref, acc_ref = refs
        res_ref = None
    k = pl.program_id(1)

    @pl.when(k == 0)
    def _():
        acc_ref[...] = jnp.zeros_like(acc_ref)

    acc_ref[...] += jnp.dot(x_ref[...], w_ref[...],
                            preferred_element_type=jnp.float32)

    @pl.when(k == pl.num_programs(1) - 1)
    def _():
        y = acc_ref[...] + b_ref[...].astype(jnp.float32)
        if activation == "gelu":
            y = _gelu(y)
        if res_ref is not None:
            y = y + res_ref[...].astype(jnp.float32)
        o_ref[...] = _layer_norm_f32(y, g_ref, bt_ref).astype(o_ref.dtype)


def matmul_ln(x2d, w, b, gamma, beta, residual=None, activation=None,
              tm_target=512, tk_target=1024):
    """LayerNorm((x2d @ w + b [+ act]) [+ residual]) with fused epilogue."""
    M, K = x2d.shape
    N = w.shape[1]
    itemsize = jnp.dtype(x2d.dtype).itemsize
    tm = _pick_tile(M, tm_target, _sublane_align(x2d.dtype))
    tk = _pick_tile(K, tk_target, 128)
    grid = (M // tm, K // tk)
    has_res = residual is not None

    in_specs = [
        pl.BlockSpec((tm, tk), lambda i, k: (i, k)),
        pl.BlockSpec((tk, N), lambda i, k: (k, 0)),
        pl.BlockSpec((1, N), lambda i, k: (0, 0)),
    ]
    args = [x2d, w, b.reshape(1, N)]
    if has_res:
        in_specs.append(pl.BlockSpec((tm, N), lambda i, k: (i, 0)))
        args.append(residual)
    in_specs += [
        pl.BlockSpec((1, N), lambda i, k: (0, 0)),
        pl.BlockSpec((1, N), lambda i, k: (0, 0)),
    ]
    args += [gamma.reshape(1, N), beta.reshape(1, N)]

    cost = pl.CostEstimate(
        flops=int(2 * M * N * K + 8 * M * N),
        transcendentals=int(M * N) if activation == "gelu" else 0,
        bytes_accessed=int((M * K + K * N + (1 + has_res) * M * N) * itemsize
                           + 3 * 4 * N),
    )
    return pl.pallas_call(
        functools.partial(_matmul_ln_kernel, activation=activation,
                          has_residual=has_res),
        out_shape=jax.ShapeDtypeStruct((M, N), x2d.dtype),
        grid=grid,
        in_specs=in_specs,
        out_specs=pl.BlockSpec((tm, N), lambda i, k: (i, 0)),
        scratch_shapes=[pltpu.VMEM((tm, N), jnp.float32)],
        compiler_params=pltpu.CompilerParams(
            dimension_semantics=("parallel", "arbitrary"),
            vmem_limit_bytes=_VMEM_LIMIT),
        cost_estimate=cost,
    )(*args)


# ----------------------------------------------------------------------------
# Fused multi-head self-attention + output projection + residual + LayerNorm.
# Grid = (B, H): per-head BlockSpecs slice the fused [B, S, 3D] QKV slab on the
# lane dim (no whole-slab materialization, no concat).  The head axis is the
# reduction axis for the output projection: each head's ctx [S, Dh] is matmul'd
# against its wo slice [Dh, D] into an f32 [S, D] accumulator; bias + residual
# + LayerNorm run once at the last head.  The 1/sqrt(Dh) scale is folded into
# the Q projection weights, so no extra scaling here.
# ----------------------------------------------------------------------------
def _attn_out_ln_kernel(q_ref, k_ref, v_ref, mask_ref, wo_ref, bo_ref,
                        res_ref, g_ref, bt_ref, o_ref, acc_ref):
    h = pl.program_id(1)

    @pl.when(h == 0)
    def _():
        acc_ref[...] = jnp.zeros_like(acc_ref)

    q = q_ref[0]                                  # [S, Dh]
    k = k_ref[0]                                  # [S, Dh]
    v = v_ref[0]                                  # [S, Dh]
    m = mask_ref[0].astype(jnp.float32)           # [1, S] additive mask

    # contract on the last axis of both -> no explicit k.T / XLU transpose
    s = jax.lax.dot_general(q, k, (((1,), (1,)), ((), ())),
                            preferred_element_type=jnp.float32)
    s = s + m
    s = s - jnp.max(s, axis=-1, keepdims=True)
    p = jnp.exp(s)
    p = p * pl.reciprocal(jnp.sum(p, axis=-1, keepdims=True), approx=True)
    ctx = jnp.dot(p.astype(v.dtype), v, preferred_element_type=jnp.float32)

    # per-head slice of the output projection, accumulated over heads
    acc_ref[...] += jnp.dot(ctx.astype(wo_ref.dtype), wo_ref[...],
                            preferred_element_type=jnp.float32)

    @pl.when(h == pl.num_programs(1) - 1)
    def _():
        y = (acc_ref[...] + bo_ref[...].astype(jnp.float32)
             + res_ref[0].astype(jnp.float32))
        o_ref[0] = _layer_norm_f32(y, g_ref, bt_ref).astype(o_ref.dtype)


def attention_out_ln(qkv3d, add_mask, x3d, wo, bo, gamma, beta, num_heads):
    """qkv3d: [B, S, 3D] fused projections (scale folded into Q); returns
    LayerNorm(attention_context @ wo + bo + x3d)  as [B, S, D]."""
    B, S, threeD = qkv3d.shape
    D = threeD // 3
    Dh = D // num_heads
    H = num_heads
    itemsize = jnp.dtype(qkv3d.dtype).itemsize
    cost = pl.CostEstimate(
        flops=int(B * (4 * S * S * D + 2 * S * D * D)),
        transcendentals=int(B * H * S * S),
        bytes_accessed=int((B * S * 3 * D + 2 * B * S * D + D * D) * itemsize
                           + B * S * 4 + 3 * 4 * D),
    )
    return pl.pallas_call(
        _attn_out_ln_kernel,
        out_shape=jax.ShapeDtypeStruct((B, S, D), qkv3d.dtype),
        grid=(B, H),
        in_specs=[
            pl.BlockSpec((1, S, Dh), lambda b, h: (b, 0, h)),          # Q head h
            pl.BlockSpec((1, S, Dh), lambda b, h: (b, 0, H + h)),      # K head h
            pl.BlockSpec((1, S, Dh), lambda b, h: (b, 0, 2 * H + h)),  # V head h
            pl.BlockSpec((1, 1, S), lambda b, h: (b, 0, 0)),           # mask
            pl.BlockSpec((Dh, D), lambda b, h: (h, 0)),                # wo slice
            pl.BlockSpec((1, D), lambda b, h: (0, 0)),                 # bo
            pl.BlockSpec((1, S, D), lambda b, h: (b, 0, 0)),           # residual
            pl.BlockSpec((1, D), lambda b, h: (0, 0)),                 # gamma
            pl.BlockSpec((1, D), lambda b, h: (0, 0)),                 # beta
        ],
        out_specs=pl.BlockSpec((1, S, D), lambda b, h: (b, 0, 0)),
        scratch_shapes=[pltpu.VMEM((S, D), jnp.float32)],
        compiler_params=pltpu.CompilerParams(
            dimension_semantics=("parallel", "arbitrary"),
            vmem_limit_bytes=_VMEM_LIMIT),
        cost_estimate=cost,
    )(qkv3d, qkv3d, qkv3d, add_mask, wo, bo.reshape(1, D), x3d,
      gamma.reshape(1, D), beta.reshape(1, D))


# ----------------------------------------------------------------------------
# Fallback attention for head_dim not a multiple of 128 (lane-tile constraint):
# per-batch kernel, heads unrolled in-kernel.  Not used at the test shapes.
# ----------------------------------------------------------------------------
def _mhsa_fallback_kernel(qkv_ref, mask_ref, o_ref, *, num_heads, head_dim, hidden):
    qkv = qkv_ref[0]                          # [S, 3D]
    m = mask_ref[0].astype(jnp.float32)       # [1, S]
    outs = []
    for h in range(num_heads):
        q = qkv[:, h * head_dim:(h + 1) * head_dim]
        k = qkv[:, hidden + h * head_dim:hidden + (h + 1) * head_dim]
        v = qkv[:, 2 * hidden + h * head_dim:2 * hidden + (h + 1) * head_dim]
        s = jax.lax.dot_general(q, k, (((1,), (1,)), ((), ())),
                                preferred_element_type=jnp.float32)
        s = s + m
        s = s - jnp.max(s, axis=-1, keepdims=True)
        p = jnp.exp(s)
        p = p * pl.reciprocal(jnp.sum(p, axis=-1, keepdims=True), approx=True)
        outs.append(jnp.dot(p.astype(v.dtype), v, preferred_element_type=jnp.float32))
    o_ref[0] = jnp.concatenate(outs, axis=-1).astype(o_ref.dtype)


def attention_fallback(qkv3d, add_mask, num_heads, hidden):
    B, S, threeD = qkv3d.shape
    head_dim = hidden // num_heads
    return pl.pallas_call(
        functools.partial(_mhsa_fallback_kernel, num_heads=num_heads,
                          head_dim=head_dim, hidden=hidden),
        out_shape=jax.ShapeDtypeStruct((B, S, hidden), qkv3d.dtype),
        grid=(B,),
        in_specs=[
            pl.BlockSpec((1, S, threeD), lambda b: (b, 0, 0)),
            pl.BlockSpec((1, 1, S), lambda b: (b, 0, 0)),
        ],
        out_specs=pl.BlockSpec((1, S, hidden), lambda b: (b, 0, 0)),
        compiler_params=pltpu.CompilerParams(
            dimension_semantics=("parallel",),
            vmem_limit_bytes=_VMEM_LIMIT),
    )(qkv3d, add_mask)


# ----------------------------------------------------------------------------
# Model composition (glue in plain JAX; compute in Pallas kernels above)
# ----------------------------------------------------------------------------
def bert_layer(p, x, add_mask, num_heads):
    """BertLayer / BertImageLayer: self-attn + FFN, post-LN residuals."""
    B, S, D = x.shape
    head_dim = D // num_heads
    x2 = x.reshape(B * S, D)

    # fused QKV projection (scale already folded into the Q weights);
    # tn_target=1024 keeps the 3D-wide output in few lane-dense j-steps.
    qkv = linear(x2, p["wqkv"], p["bqkv"], tn_target=1024)      # [B*S, 3D]

    if head_dim % 128 == 0:
        # attention + output projection + residual + LN fused in one kernel
        h1 = attention_out_ln(qkv.reshape(B, S, 3 * D), add_mask, x,
                              p["wo"], p["bo"], p["ln1_g"], p["ln1_b"],
                              num_heads).reshape(B * S, D)
    else:
        # TODO(synk): fallback path (head_dim not 128-aligned) keeps the
        # unfused output projection.
        ctx = attention_fallback(qkv.reshape(B, S, 3 * D), add_mask, num_heads, D)
        h1 = matmul_ln(ctx.reshape(B * S, D), p["wo"], p["bo"],
                       p["ln1_g"], p["ln1_b"], residual=x2)

    # FFN: matmul+bias+GELU, then matmul + residual + LayerNorm (fused)
    inter = linear(h1, p["wi"], p["bi"], activation="gelu")
    h2 = matmul_ln(inter, p["wo2"], p["bo2"], p["ln2_g"], p["ln2_b"], residual=h1)
    return h2.reshape(B, S, D)


def visn_fc(p, v_feats):
    """BertVEmbeddings: Linear(v_feat_dim -> hidden) + LayerNorm (fused).
    TODO(synk): location/position embeddings of basic_layer.BertVEmbeddings
    omitted (source not provided); feature projection + LayerNorm implemented."""
    B, Sv, Vd = v_feats.shape
    D = p["w"].shape[1]
    h = matmul_ln(v_feats.reshape(B * Sv, Vd), p["w"], p["b"],
                  p["gamma"], p["beta"], residual=None)
    return h.reshape(B, Sv, D)


def tden_forward(params, lang_feats, v_feats, lang_mask, v_mask, num_heads,
                 compute_dtype=jnp.bfloat16):
    """Matches TDEN.forward: returns (lang_feats_arr, v_feats_arr).
    Activations are cast to `compute_dtype` (bf16 MXU path); accumulation and
    bias/GELU/residual/LayerNorm math stay in f32 inside the kernels."""
    lang_feats = lang_feats.astype(compute_dtype)
    v_feats = v_feats.astype(compute_dtype)

    v = visn_fc(params["visn_fc"], v_feats)

    lang_add_mask = ((1.0 - lang_mask) * -10000.0)[:, None, :]   # [B, 1, S_L] f32
    v_add_mask = ((1.0 - v_mask) * -10000.0)[:, None, :]         # [B, 1, S_V] f32

    lang_feats_arr = []
    x = lang_feats
    for lp in params["layer"]:
        x = bert_layer(lp, x, lang_add_mask, num_heads)
        lang_feats_arr.append(x)

    v_feats_arr = []
    for vp in params["v_layer"]:
        v = bert_layer(vp, v, v_add_mask, num_heads)
        v_feats_arr.append(v)

    return lang_feats_arr, v_feats_arr


# ----------------------------------------------------------------------------
# Deterministic parameter init (weight matrices in bf16, vectors in f32)
# ----------------------------------------------------------------------------
def _init_dense(key, din, dout):
    return (jax.random.normal(key, (din, dout), jnp.float32) * 0.02,
            jnp.zeros((dout,), jnp.float32))


def _init_bert_layer(key, hidden, inter, num_heads, w_dtype):
    ks = jax.random.split(key, 6)
    wq, bq = _init_dense(ks[0], hidden, hidden)
    wk, bk = _init_dense(ks[1], hidden, hidden)
    wv, bv = _init_dense(ks[2], hidden, hidden)
    wo, bo = _init_dense(ks[3], hidden, hidden)
    wi, bi = _init_dense(ks[4], hidden, inter)
    wo2, bo2 = _init_dense(ks[5], inter, hidden)
    scale = 1.0 / math.sqrt(hidden // num_heads)
    ones = jnp.ones((hidden,), jnp.float32)
    zeros = jnp.zeros((hidden,), jnp.float32)
    return dict(
        # fused QKV with attention scale folded into the Q block
        wqkv=jnp.concatenate([wq * scale, wk, wv], axis=1).astype(w_dtype),
        bqkv=jnp.concatenate([bq * scale, bk, bv], axis=0),
        wo=wo.astype(w_dtype), bo=bo, ln1_g=ones, ln1_b=zeros,
        wi=wi.astype(w_dtype), bi=bi,
        wo2=wo2.astype(w_dtype), bo2=bo2, ln2_g=ones, ln2_b=zeros,
    )


def init_params(key, hidden, inter, v_dim, n_layers, n_v_layers, num_heads,
                w_dtype=jnp.bfloat16):
    kv, *kl = jax.random.split(key, 1 + n_layers + n_v_layers)
    w, b = _init_dense(kv, v_dim, hidden)
    params = {
        "visn_fc": dict(
            w=w.astype(w_dtype), b=b,
            gamma=jnp.ones((hidden,), jnp.float32),
            beta=jnp.zeros((hidden,), jnp.float32),
        ),
        "layer": [_init_bert_layer(kl[i], hidden, inter, num_heads, w_dtype)
                  for i in range(n_layers)],
        "v_layer": [_init_bert_layer(kl[n_layers + i], hidden, inter, num_heads,
                                     w_dtype)
                    for i in range(n_v_layers)],
    }
    return params


# ----------------------------------------------------------------------------
if __name__ == "__main__":
    # Small shapes; head_dim = 256 / 2 = 128 so the fused (B, H)-grid attention
    # path (lane-sliced QKV BlockSpecs) is exercised.
    B, S_L, S_V = 2, 8, 8
    HIDDEN, HEADS, INTER = 256, 2, 512
    V_DIM = 64
    NUM_L_LAYERS, NUM_V_LAYERS = 2, 2

    root = jax.random.PRNGKey(0)
    k_params, k_lang, k_vis = jax.random.split(root, 3)

    params = init_params(k_params, HIDDEN, INTER, V_DIM,
                         NUM_L_LAYERS, NUM_V_LAYERS, HEADS)

    lang_feats = jax.random.normal(k_lang, (B, S_L, HIDDEN), jnp.float32)
    v_feats = jax.random.normal(k_vis, (B, S_V, V_DIM), jnp.float32)
    lang_mask = jnp.ones((B, S_L), jnp.float32)  # 1 = attend
    v_mask = jnp.ones((B, S_V), jnp.float32)

    lang_arr, v_arr = tden_forward(
        params, lang_feats, v_feats, lang_mask, v_mask, num_heads=HEADS
    )
    jax.block_until_ready((lang_arr, v_arr))

    assert len(lang_arr) == NUM_L_LAYERS and len(v_arr) == NUM_V_LAYERS
    assert lang_arr[-1].shape == (B, S_L, HIDDEN)
    assert v_arr[-1].shape == (B, S_V, HIDDEN)
    assert all(jnp.all(jnp.isfinite(a.astype(jnp.float32))) for a in lang_arr + v_arr)
    print("KERNEL_OK")
</pallas_src>

<mosaic_0001>
module attributes {stable_mosaic.version = 11 : i64} {
  func.func @_matmul_ln_kernel(%arg0: i32, %arg1: i32, %arg2: memref<16x64xbf16, #tpu.memory_space<vmem>>, %arg3: memref<64x256xbf16, #tpu.memory_space<vmem>>, %arg4: memref<1x256xf32, #tpu.memory_space<vmem>>, %arg5: memref<1x256xf32, #tpu.memory_space<vmem>>, %arg6: memref<1x256xf32, #tpu.memory_space<vmem>>, %arg7: memref<16x256xbf16, #tpu.memory_space<vmem>>, %arg8: memref<16x256xf32, #tpu.memory_space<vmem>>) attributes {dimension_semantics = [#tpu.dimension_semantics<parallel>, #tpu.dimension_semantics<arbitrary>], iteration_bounds = array<i64: 1, 1>, scalar_prefetch = 0 : i64, scratch_operands = 1 : i64, tpu.core_type = #tpu.core_type<tc>, window_params = [{transform_indices = @transform_0, window_bounds = array<i64: 16, 64>}, {transform_indices = @transform_1, window_bounds = array<i64: 64, 256>}, {pipeline_mode = #tpu.pipeline_mode<synchronous>, transform_indices = @transform_2, window_bounds = array<i64: 1, 256>}, {pipeline_mode = #tpu.pipeline_mode<synchronous>, transform_indices = @transform_3, window_bounds = array<i64: 1, 256>}, {pipeline_mode = #tpu.pipeline_mode<synchronous>, transform_indices = @transform_4, window_bounds = array<i64: 1, 256>}, {transform_indices = @transform_5, window_bounds = array<i64: 16, 256>}]} {
    %c0_i32 = arith.constant 0 : i32
    %0 = arith.cmpi eq, %arg1, %c0_i32 : i32
    %1 = arith.extui %0 : i1 to i32
    %c0_i32_0 = arith.constant 0 : i32
    %2 = arith.cmpi ne, %1, %c0_i32_0 : i32
    scf.if %2 {
      %cst_10 = arith.constant 0.000000e+00 : f32
      %12 = vector.broadcast %cst_10 : f32 to vector<16x256xf32>
      %c0_11 = arith.constant 0 : index
      %c0_12 = arith.constant 0 : index
      %13 = vector.load %arg8[%c0_11, %c0_12] : memref<16x256xf32, #tpu.memory_space<vmem>>, vector<16x256xf32>
      tpu.vector_store %arg8[%c0_11, %c0_12], %12 {strides = array<i32>} : memref<16x256xf32, #tpu.memory_space<vmem>>, vector<16x256xf32>,
    } else {
    }
    %c0 = arith.constant 0 : index
    %c0_1 = arith.constant 0 : index
    %3 = vector.load %arg8[%c0, %c0_1] : memref<16x256xf32, #tpu.memory_space<vmem>>, vector<16x256xf32>
    %c0_2 = arith.constant 0 : index
    %c0_3 = arith.constant 0 : index
    %4 = vector.load %arg2[%c0_2, %c0_3] : memref<16x64xbf16, #tpu.memory_space<vmem>>, vector<16x64xbf16>
    %c0_4 = arith.constant 0 : index
    %c0_5 = arith.constant 0 : index
    %5 = vector.load %arg3[%c0_4, %c0_5] : memref<64x256xbf16, #tpu.memory_space<vmem>>, vector<64x256xbf16>
    %cst = arith.constant dense<0.000000e+00> : vector<16x256xf32>
    %6 = tpu.matmul %4, %5, %cst {dimension_numbers = #tpu.dot_dimension_numbers<[1], [0], [0], [1], [0, 0, 1, 1], [], []>} : vector<16x64xbf16>, vector<64x256xbf16>, vector<16x256xf32> -> vector<16x256xf32>
    %7 = arith.addf %3, %6 : vector<16x256xf32>
    %c0_6 = arith.constant 0 : index
    %c0_7 = arith.constant 0 : index
    %8 = vector.load %arg8[%c0_6, %c0_7] : memref<16x256xf32, #tpu.memory_space<vmem>>, vector<16x256xf32>
    tpu.vector_store %arg8[%c0_6, %c0_7], %7 {strides = array<i32>} : memref<16x256xf32, #tpu.memory_space<vmem>>, vector<16x256xf32>,
    %c0_i32_8 = arith.constant 0 : i32
    %9 = arith.cmpi eq, %arg1, %c0_i32_8 : i32
    %10 = arith.extui %9 : i1 to i32
    %c0_i32_9 = arith.constant 0 : i32
    %11 = arith.cmpi ne, %10, %c0_i32_9 : i32
    scf.if %11 {
      %c0_10 = arith.constant 0 : index
      %c0_11 = arith.constant 0 : index
      %12 = vector.load %arg8[%c0_10, %c0_11] : memref<16x256xf32, #tpu.memory_space<vmem>>, vector<16x256xf32>
      %c0_12 = arith.constant 0 : index
      %c0_13 = arith.constant 0 : index
      %13 = vector.load %arg4[%c0_12, %c0_13] : memref<1x256xf32, #tpu.memory_space<vmem>>, vector<1x256xf32>
      %14 = vector.broadcast %13 : vector<1x256xf32> to vector<16x256xf32>
      %15 = arith.addf %12, %14 : vector<16x256xf32>
      %cst_14 = arith.constant dense<0.000000e+00> : vector<16xf32>
      %16 = vector.multi_reduction <add>, %15, %cst_14 [1] : vector<16x256xf32> to vector<16xf32>
      %17 = vector.shape_cast %16 : vector<16xf32> to vector<16x1xf32>
      %18 = arith.mulf %15, %15 : vector<16x256xf32>
      %cst_15 = arith.constant dense<0.000000e+00> : vector<16xf32>
      %19 = vector.multi_reduction <add>, %18, %cst_15 [1] : vector<16x256xf32> to vector<16xf32>
      %20 = vector.shape_cast %19 : vector<16xf32> to vector<16x1xf32>
      %cst_16 = arith.constant 2.560000e+02 : f32
      %21 = vector.broadcast %cst_16 : f32 to vector<16x1xf32>
      %22 = arith.divf %17, %21 : vector<16x1xf32>
      %cst_17 = arith.constant 2.560000e+02 : f32
      %23 = vector.broadcast %cst_17 : f32 to vector<16x1xf32>
      %24 = arith.divf %20, %23 : vector<16x1xf32>
      %25 = arith.mulf %22, %22 : vector<16x1xf32>
      %26 = arith.subf %24, %25 : vector<16x1xf32>
      %cst_18 = arith.constant 0.000000e+00 : f32
      %27 = vector.broadcast %cst_18 : f32 to vector<16x1xf32>
      %28 = arith.maximumf %26, %27 : vector<16x1xf32>
      %29 = vector.broadcast %22 : vector<16x1xf32> to vector<16x256xf32>
      %30 = arith.subf %15, %29 : vector<16x256xf32>
      %cst_19 = arith.constant 9.99999996E-13 : f32
      %31 = vector.broadcast %cst_19 : f32 to vector<16x1xf32>
      %32 = arith.addf %28, %31 : vector<16x1xf32>
      %33 = math.rsqrt %32 : vector<16x1xf32>
      %34 = vector.broadcast %33 : vector<16x1xf32> to vector<16x256xf32>
      %35 = arith.mulf %30, %34 : vector<16x256xf32>
      %c0_20 = arith.constant 0 : index
      %c0_21 = arith.constant 0 : index
      %36 = vector.load %arg5[%c0_20, %c0_21] : memref<1x256xf32, #tpu.memory_space<vmem>>, vector<1x256xf32>
      %37 = vector.broadcast %36 : vector<1x256xf32> to vector<16x256xf32>
      %38 = arith.mulf %35, %37 : vector<16x256xf32>
      %c0_22 = arith.constant 0 : index
      %c0_23 = arith.constant 0 : index
      %39 = vector.load %arg6[%c0_22, %c0_23] : memref<1x256xf32, #tpu.memory_space<vmem>>, vector<1x256xf32>
      %40 = vector.broadcast %39 : vector<1x256xf32> to vector<16x256xf32>
      %41 = arith.addf %38, %40 : vector<16x256xf32>
      %42 = arith.truncf %41 : vector<16x256xf32> to vector<16x256xbf16>
      %c0_24 = arith.constant 0 : index
      %c0_25 = arith.constant 0 : index
      %43 = vector.load %arg7[%c0_24, %c0_25] : memref<16x256xbf16, #tpu.memory_space<vmem>>, vector<16x256xbf16>
      tpu.vector_store %arg7[%c0_24, %c0_25], %42 {strides = array<i32>} : memref<16x256xbf16, #tpu.memory_space<vmem>>, vector<16x256xbf16>,
    } else {
    }
    return
  }
  func.func @transform_0(%arg0: i32, %arg1: i32) -> (i32, i32) {
    %c0_i32 = arith.constant 0 : i32
    return %arg0, %arg1 : i32, i32
  }
  func.func @transform_1(%arg0: i32, %arg1: i32) -> (i32, i32) {
    %c0_i32 = arith.constant 0 : i32
    %c0_i32_0 = arith.constant 0 : i32
    return %arg1, %c0_i32 : i32, i32
  }
  func.func @transform_2(%arg0: i32, %arg1: i32) -> (i32, i32) {
    %c0_i32 = arith.constant 0 : i32
    %c0_i32_0 = arith.constant 0 : i32
    %c0_i32_1 = arith.constant 0 : i32
    return %c0_i32, %c0_i32_0 : i32, i32
  }
  func.func @transform_3(%arg0: i32, %arg1: i32) -> (i32, i32) {
    %c0_i32 = arith.constant 0 : i32
    %c0_i32_0 = arith.constant 0 : i32
    %c0_i32_1 = arith.constant 0 : i32
    return %c0_i32, %c0_i32_0 : i32, i32
  }
  func.func @transform_4(%arg0: i32, %arg1: i32) -> (i32, i32) {
    %c0_i32 = arith.constant 0 : i32
    %c0_i32_0 = arith.constant 0 : i32
    %c0_i32_1 = arith.constant 0 : i32
    return %c0_i32, %c0_i32_0 : i32, i32
  }
  func.func @transform_5(%arg0: i32, %arg1: i32) -> (i32, i32) {
    %c0_i32 = arith.constant 0 : i32
    %c0_i32_0 = arith.constant 0 : i32
    return %arg0, %c0_i32 : i32, i32
  }
}

</mosaic_0001>

<bundles_post_ra>
// kernel: tpu_custom_call.1
= control target key start
LH: loop header
LB: loop body
LE: loop exit
PB: predicated region body
PF: predicated region fallthrough
CT: control target
= control target key end

     0   :  { %10 = vsyncpa [#allocation4], 0  ;;  %s498_s0 = inlined_call_operand.hbm [shape: bf16[16,64], index: 0, kind: input, shape index: {}]   ;;  %s499_s1 = inlined_call_operand.hbm [shape: bf16[64,256], index: 1, kind: input, shape index: {}]   ;;  %s500_s2 = inlined_call_operand.vmem [shape: f32[1,256], index: 2, kind: input, shape index: {}]   ;;  %s501_s3 = inlined_call_operand.vmem [shape: f32[1,256], index: 3, kind: input, shape index: {}]   ;;  %s502_s4 = inlined_call_operand.vmem [shape: f32[1,256], index: 4, kind: input, shape index: {}]   ;;  %s503_s5 = inlined_call_operand.hbm [shape: bf16[16,256], index: 5, kind: output, shape index: {}]  }
   0x1   :  { %11 = vsyncpa [#allocation7], 0 }
   0x2   :  { %12 = vsyncpa [#allocation5], 0  ;;  %s409_s18 = smov [#allocation3]   ;;  %s337_s22 = scalar_lea.hbm %s498_s0, 128 }
   0x3   :  { %s18_s19 = sshll.u32 %s409_s18, 4  ;;  %p338_p0 = scmp.ne.s32.totalorder %s498_s0, %s337_s22  ;;  %s19_s19 = int_to_ptr.vmem [resolvable:$true] %s18_s19 }
   0x4   :  { %p341_p1 = scmp.lt.u32.totalorder %s337_s22, %s498_s0 }
   0x6   :  { %p343_p2 = pnand %p341_p1, %p338_p0 }
   0x8   :  { %346 = shalt.err (!%p343_p2)
}
   0x9   :  { %s347_s27 = scalar_lea.vmem %s19_s19, 128  ;;  %p352_p4 = scmp.lt.s32.totalorder %s19_s19, %s19_s19 }
   0xa   :  { %p348_p3 = scmp.ne.s32.totalorder %s19_s19, %s347_s27  ;;  %p353_p5 = scmp.lt.s32.totalorder %s347_s27, %s347_s27 }
   0xc   :  { %p354_p6 = por %p353_p5, %p352_p4 }
   0xe   :  { %p355_p7 = pnand %p354_p6, %p348_p3 }
  0x10   :  { %358 = shalt.err (!%p355_p7)
}
  0x11   :  { %s410_s28 = smov 64   ;;  %s411_s29 = smov 4  }
  0x12   :  { %24 = dma.hbm_to_vmem [thread:$0]  %s498_s0, 128, %s19_s19, [#allocation4], %s410_s28, %s410_s28, %s411_s29  }
  0x13   :  { %s412_s7 = smov [#allocation6]   ;;  %s359_s11 = scalar_lea.hbm %s499_s1, 1024 }
  0x14   :  { %s30_s8 = sshll.u32 %s412_s7, 4  ;;  %p360_p8 = scmp.ne.s32.totalorder %s499_s1, %s359_s11  ;;  %s31_s8 = int_to_ptr.vmem [resolvable:$true] %s30_s8 }
  0x15   :  { %p363_p9 = scmp.lt.u32.totalorder %s359_s11, %s499_s1 }
  0x17   :  { %p365_p10 = pnand %p363_p9, %p360_p8 }
  0x19   :  { %368 = shalt.err (!%p365_p10)
}
  0x1a   :  { %s369_s16 = scalar_lea.vmem %s31_s8, 1024  ;;  %p374_p12 = scmp.lt.s32.totalorder %s31_s8, %s31_s8 }
  0x1b   :  { %p370_p11 = scmp.ne.s32.totalorder %s31_s8, %s369_s16  ;;  %p375_p13 = scmp.lt.s32.totalorder %s369_s16, %s369_s16 }
  0x1d   :  { %p376_p0 = por %p375_p13, %p374_p12 }
  0x1f   :  { %p377_p1 = pnand %p376_p0, %p370_p11 }
  0x21   :  { %380 = shalt.err (!%p377_p1)
}
  0x22   :  { %s413_s0 = smov 128   ;;  %s414_s17 = smov 8  }
  0x23   :  { %36 = dma.hbm_to_vmem [thread:$0]  %s499_s1, 1024, %s31_s8, [#allocation7], %s413_s0, %s413_s0, %s414_s17  }
  0x24   :  { %403 = dma.done.wait [#allocation4], 128  }
  0x25   :  { %404 = vsyncadd [#allocation4], 4294967168 }
  0x26   :  { %405 = dma.done.wait [#allocation7], 1024  }
  0x27   :  { %406 = vsyncadd [#allocation7], 4294966272  ;;  %v415_v0 = vmov 0   ;;  %v320_v1 = vld [vmem:[#allocation6 + $0x4] ss:$8 sps:$4 sm:$0xff]   ;;  %v332_v9 = vld [vmem:[#allocation3] sm:$0xff]   ;;  %v181_v10 = vlaneseq }
  0x28   :  { %153 = vmatprep.mubr.bf16.mxu0 %v415_v0  ;;  %v322_v2 = vld [vmem:[#allocation6] ss:$8 sps:$4 sm:$0xff]   ;;  %121 = vmatprep.subr.bf16.mxu0 %v320_v1  ;;  %v323_v3 = vld [vmem:[#allocation6 + $0x14] ss:$8 sps:$4 sm:$0xff]   ;;  %v325_v4 = vld [vmem:[#allocation6 + $0x10] ss:$8 sps:$4 sm:$0xff]  }
  0x29   :  { %122 = vmatpush1.bf16.msra.mxu0 %v322_v2  ;;  %v326_v5 = vld [vmem:[#allocation6 + $0x24] ss:$8 sps:$4 sm:$0xff]   ;;  %v328_v6 = vld [vmem:[#allocation6 + $0x20] ss:$8 sps:$4 sm:$0xff]   ;;  %v329_v7 = vld [vmem:[#allocation6 + $0x34] ss:$8 sps:$4 sm:$0xff]  }
  0x2a   :  { %123 = vmatprep.subr.bf16.mxu0 %v323_v3  ;;  %v331_v8 = vld [vmem:[#allocation6 + $0x30] ss:$8 sps:$4 sm:$0xff]   ;;  %vm117_vm0 = vcmask 523264   ;;  %v182_v11 = vshrl.u32 %v181_v10, 7 }
  0x2b   :  { %v179_v13 = vld [vmem:[%s500_s2] sm:$0x3] }
  0x2c   :  { %v183_v12 = vsub.s32 0, %v182_v11  ;;  %v187_v14 = vsub.s32 1, %v182_v11  ;;  %v234_v49 = vld [vmem:[%s501_s3] sm:$0x3]  ;;  %s416_s3 = smov [#allocation8]  }
  0x2d   :  { %124 = vmatpush1.bf16.msra.mxu0 %v325_v4  ;;  %v250_v50 = vld [vmem:[%s502_s4] sm:$0x3]  ;;  %s285_s4 = sshll.u32 %s416_s3, 4  ;;  %s286_s4 = int_to_ptr.vmem [resolvable:$true] %s285_s4 }
  0x2e   :  { %125 = vmatprep.subr.bf16.mxu0 %v326_v5  ;;  %v184_v15 = vrot.slane %v179_v13, %v183_v12  ;;  %v188_v16 = vrot.slane %v179_v13, %v187_v14  ;;  %v239_v53 = vrot.slane %v234_v49, %v183_v12  ;;  %v243_v54 = vrot.slane %v234_v49, %v187_v14  ;;  %s381_s24 = scalar_lea.vmem %s286_s4, 256  ;;  %p386_p3 = scmp.lt.s32.totalorder %s286_s4, %s286_s4 }
  0x2f   :  { %v255_v58 = vrot.slane %v250_v50, %v183_v12  ;;  %v259_v59 = vrot.slane %v250_v50, %v187_v14  ;;  %p382_p2 = scmp.ne.s32.totalorder %s286_s4, %s381_s24  ;;  %p387_p4 = scmp.lt.s32.totalorder %s381_s24, %s381_s24 }
  0x31   :  { %126 = vmatpush1.bf16.msra.mxu0 %v328_v6  ;;  %p388_p5 = por %p387_p4, %p386_p3 }
  0x32   :  { %127 = vmatprep.subr.bf16.mxu0 %v329_v7 }
  0x33   :  { %p389_p6 = pnand %p388_p5, %p382_p2 }
  0x35   :  { %128 = vmatpush1.bf16.msra.mxu0 %v331_v8 }
  0x38   :  { %307 = vmatmul.mubr.msk.bf16.vlgmr.msra.gmra.mrb[0].mxu0 %vm117_vm0, %v332_v9 }
 0x10b   :  { %v155_v17 = vpop.f32.mrb[0].mxu0 }
 0x10c   :  { %v191_v18 = vadd.f32 %v184_v15, %v155_v17  ;;  %v157_v19 = vpop.f32.mrb[1].mxu0 }
 0x10d   :  { %v192_v20 = vadd.f32 %v188_v16, %v157_v19  ;;  %v159_v21 = vpop.f32.mrb[2].mxu0 }
 0x10e   :  { %v193_v22 = vadd.f32 %v184_v15, %v159_v21  ;;  %v161_v23 = vpop.f32.mrb[3].mxu0  ;;  %v201_v24 = vmul.f32 %v191_v18, %v191_v18 }
 0x10f   :  { %v194_v25 = vadd.f32 %v188_v16, %v161_v23  ;;  %v195_v26 = vadd.f32 %v192_v20, %v191_v18  ;;  %v202_v27 = vmul.f32 %v192_v20, %v192_v20 }
 0x110   :  { %v203_v29 = vmul.f32 %v193_v22, %v193_v22 }
 0x111   :  { %196 = vadd.xlane.f32.xlu0 %v195_v26  ;;  %v205_v28 = vadd.f32 %v202_v27, %v201_v24  ;;  %v204_v30 = vmul.f32 %v194_v25, %v194_v25  ;;  %v198_v31 = vadd.f32 %v194_v25, %v193_v22 }
 0x113   :  { %206 = vadd.xlane.f32.xlu1 %v205_v28  ;;  %v208_v32 = vadd.f32 %v204_v30, %v203_v29 }
 0x115   :  { %199 = vadd.xlane.f32.xlu0 %v198_v31 }
 0x117   :  { %209 = vadd.xlane.f32.xlu1 %v208_v32 }
 0x19e   :  { %v197_v33 = vpop.xlane.xlu0 %196 }
 0x19f   :  { %v212_v34 = vmul.f32 0.00390625, %v197_v33 }
 0x1a0   :  { %v207_v35 = vpop.xlane.xlu1 %206 }
 0x1a1   :  { %v214_v36 = vmul.f32 0.00390625, %v207_v35  ;;  %v216_v37 = vmul.f32 %v212_v34, %v212_v34  ;;  %v222_v51 = vsub.f32 %v191_v18, %v212_v34  ;;  %v223_v52 = vsub.f32 %v192_v20, %v212_v34 }
 0x1a2   :  { %v200_v38 = vpop.xlane.xlu0 %199 }
 0x1a3   :  { %v218_v39 = vsub.f32 %v214_v36, %v216_v37  ;;  %v213_v40 = vmul.f32 0.00390625, %v200_v38 }
 0x1a4   :  { %v210_v41 = vpop.xlane.xlu1 %209 }
 0x1a5   :  { %v220_v42 = vmax.f32 %v218_v39, 0.0  ;;  %v215_v43 = vmul.f32 0.00390625, %v210_v41  ;;  %v217_v44 = vmul.f32 %v213_v40, %v213_v40  ;;  %v224_v62 = vsub.f32 %v193_v22, %v213_v40 }
 0x1a6   :  { %v225_v63 = vsub.f32 %v194_v25, %v213_v40 }
 0x1a7   :  { %v226_v45 = vadd.f32 1e-12, %v220_v42  ;;  %v219_v46 = vsub.f32 %v215_v43, %v217_v44 }
 0x1a9   :  { %333 = vrsqrt.f32 %v226_v45  ;;  %v221_v47 = vmax.f32 %v219_v46, 0.0 }
 0x1ab   :  { %v227_v48 = vadd.f32 1e-12, %v221_v47 }
 0x1ad   :  { %335 = vrsqrt.f32 %v227_v48 }
 0x1b3   :  { %v334_v55 = vpop.eup %333 }
 0x1b4   :  { %v230_v56 = vmul.f32 %v334_v55, %v222_v51  ;;  %v231_v57 = vmul.f32 %v334_v55, %v223_v52 }
 0x1b6   :  { %v246_v60 = vmul.f32 %v239_v53, %v230_v56  ;;  %v247_v61 = vmul.f32 %v243_v54, %v231_v57 }
 0x1b7   :  { %v336_v0 = vpop.eup %335 }
 0x1b8   :  { %v262_v1 = vadd.f32 %v255_v58, %v246_v60  ;;  %v263_v2 = vadd.f32 %v259_v59, %v247_v61  ;;  %v232_v3 = vmul.f32 %v336_v0, %v224_v62  ;;  %v233_v4 = vmul.f32 %v336_v0, %v225_v63 }
 0x1ba   :  { %v310_v5 = vpack.c.bf16 %v263_v2, %v262_v1  ;;  %v248_v6 = vmul.f32 %v239_v53, %v232_v3  ;;  %v249_v7 = vmul.f32 %v243_v54, %v233_v4 }
 0x1bc   :  { %278 = vst [vmem:[#allocation8] sm:$0xff] %v310_v5  ;;  %v264_v8 = vadd.f32 %v255_v58, %v248_v6  ;;  %v265_v9 = vadd.f32 %v259_v59, %v249_v7 }
 0x1be   :  { %v311_v10 = vpack.c.bf16 %v265_v9, %v264_v8 }
 0x1c0   :  { %279 = vst [vmem:[#allocation8 + $0x8] sm:$0xff] %v311_v10 }
 0x1c1   :  { %392 = shalt.err (!%p389_p6)
}
 0x1c2   :  { %s393_s27 = scalar_lea.hbm %s503_s5, 256 }
 0x1c3   :  { %p394_p7 = scmp.ne.s32.totalorder %s503_s5, %s393_s27  ;;  %p397_p8 = scmp.lt.u32.totalorder %s393_s27, %s503_s5 }
 0x1c5   :  { %p399_p9 = pnand %p397_p8, %p394_p7 }
 0x1c7   :  { %402 = shalt.err (!%p399_p9)
}
 0x1c8   :  { %291 = dma.vmem_to_hbm [thread:$0]  %s286_s4, 256, %s503_s5, [#allocation5], %s413_s0, %s413_s0, %s414_s17  }
 0x1c9   :  { %407 = dma.done.wait [#allocation5], 256  }
 0x1ca   :  { %408 = vsyncadd [#allocation5], 4294967040 }
 0x1cb   :  { %295 = vsyncpa [#allocation4], 1 }
 0x1cc   :  { %296 = vsyncpa [#allocation7], 1 }
 0x1cd   :  { %297 = vsyncpa [#allocation5], 1 }

</bundles_post_ra>
